<compile_context>
chip_gen: v7x
topology: tpu7x:2x2x1
jax: 0.10.0
libtpu: 0.0.40
codegen_flags: <defaults>
</compile_context>

<pallas_src>
import functools
import math

import jax
import jax.numpy as jnp
import numpy as np
from jax.experimental import pallas as pl
from jax.experimental.pallas import tpu as pltpu


_FALLBACK_VMEM_CAP = 64 * 1024 * 1024  # conservative (v7x per-TC VMEM)


def _vmem_limit_bytes() -> int:
    """Generation-aware scoped-VMEM limit: ~48 MiB on v7x, ~96 MiB on v5e/v6e."""
    try:
        cap = int(pltpu.get_tpu_info().vmem_capacity_bytes)
    except Exception:  # non-TPU backend / older runtime: stay conservative
        cap = _FALLBACK_VMEM_CAP
    return min((cap * 3) // 4, 96 * 1024 * 1024)


def _choose_tile_n(n: int, c: int, in_itemsize: int, vmem_limit: int) -> int:
    """Rows per tile, sized from the real input itemsize and the VMEM budget."""
    # Per tile row:
    #   2 streamed inputs x 2 pipeline buffers x C x itemsize  (logits, labels)
    #   + ~8 live full-width f32 intermediates (x, y, nll, softplus temps, ...)
    #   + a few bytes for the (TN,1) mask / row masks.
    per_row = 4 * c * in_itemsize + 8 * c * 4 + 16
    budget = int(vmem_limit * 0.6)
    rows = max(8, budget // per_row)
    tn = min((rows // 8) * 8, 8192)
    if n <= tn:
        return n  # whole input fits in a single block
    return tn


def _make_ncr_loss_kernel(shift, is_reg, eps, n, c, tn):
    """Build the Pallas kernel with the module's static hyper-params baked in."""

    use_clamp = eps is not None and eps > 0.0
    log_eps_neg = -math.log(eps) if use_clamp else None  # -log(eps)
    use_shift = shift is not None and shift > 0.0

    def nll_terms(xv, yv):
        """Positive NLL: -( y*log(clamp(p,eps)) + (1-y)*log(clamp(q,eps)) )."""
        if use_shift:
            # Asymmetric-loss shifted-negatives path (explicit sigmoid needed).
            s = jax.nn.sigmoid(xv)
            p_pos = jnp.maximum(s, eps) if use_clamp else s
            p_neg = jnp.minimum(1.0 - s + shift, 1.0)           # clamp(max=1)
            if use_clamp:
                p_neg = jnp.maximum(p_neg, eps)
            ln_pos = jnp.log(p_pos)
            ln_neg = jnp.log(p_neg)
            # y*ln_pos + (1-y)*ln_neg == ln_neg + y*(ln_pos - ln_neg)
            return -(ln_neg + yv * (ln_pos - ln_neg))
        # shift == 0: exact softplus rewrite (1 exp + 1 log per element).
        t = jnp.log(1.0 + jnp.exp(-jnp.abs(xv)))                # log1p(exp(-|x|))
        sp_pos = jnp.maximum(xv, 0.0) + t                       # softplus(x)  = -log(1-sigmoid)
        sp_neg = sp_pos - xv                                    # softplus(-x) = -log(sigmoid)
        if use_clamp:
            sp_pos = jnp.minimum(sp_pos, log_eps_neg)           # clamp(1-sig, min=eps)
            sp_neg = jnp.minimum(sp_neg, log_eps_neg)           # clamp(sig,   min=eps)
        # y*sp_neg + (1-y)*sp_pos == sp_pos + y*(sp_neg - sp_pos)
        return sp_pos + yv * (sp_neg - sp_pos)

    # Analytic column-0 term of the full-width relation NLL (rel_margin == 0).
    if use_shift:
        p_pos0 = max(0.5, eps) if use_clamp else 0.5
        p_neg0 = min(0.5 + shift, 1.0)
        if use_clamp:
            p_neg0 = max(p_neg0, eps)
        ln_pos0 = math.log(p_pos0)
        ln_neg0 = math.log(p_neg0)
    else:
        nll0_const = min(math.log(2.0), log_eps_neg) if use_clamp else math.log(2.0)

    def kernel(logits_ref, labels_ref, mask_ref, out_ref):
        i = pl.program_id(0)

        x = logits_ref[...].astype(jnp.float32)   # (TN, C)
        y = labels_ref[...].astype(jnp.float32)   # (TN, C)
        m = mask_ref[...].astype(jnp.float32)     # (TN, 1)

        # Row validity for the (possibly) ragged last tile.  Garbage padded
        # rows may produce NaN/Inf in nll; they are discarded only AFTER the
        # per-row lane reductions (never by multiplying a 0-mask into NaN).
        row_idx = i * tn + jax.lax.broadcasted_iota(jnp.int32, (tn, 1), 0)
        row_valid = row_idx < n                                  # (TN, 1) bool
        m = jnp.where(row_valid, m, 0.0)

        # Threshold ("NA") logit / label via lane-masked reductions (XLU slot).
        col = jax.lax.broadcasted_iota(jnp.int32, (1, c), 1)
        col0 = (col == 0).astype(jnp.float32)
        th = jnp.sum(x * col0, axis=-1, keepdims=True)           # == x[:, 0:1]
        if is_reg or use_shift:
            y0 = jnp.sum(y * col0, axis=-1, keepdims=True)       # == labels[:, 0:1]

        # Relation margins vs. threshold class, full lane width; column 0
        # evaluates to the analytically-known nll(0, y0) and is subtracted.
        nll_all = nll_terms(x - th, y)                           # (TN, C)
        row_all = jnp.sum(nll_all, axis=-1, keepdims=True)       # (TN, 1)
        if use_shift:
            nll0 = -(ln_neg0 + y0 * (ln_pos0 - ln_neg0))         # (TN, 1)
        else:
            nll0 = nll0_const                                    # scalar log 2
        row_rel = jnp.where(row_valid, row_all - nll0, 0.0)      # (TN, 1)

        p_rel = jnp.sum(row_rel * m)    # sum_rows( rel-row NLL * instance_mask )
        p_msk = jnp.sum(m)              # sum(instance_mask) over valid rows

        # NA (threshold) margin regularizer: per-row NLL, unmasked by m
        # (the mask multiplies along the other broadcast axis in the module).
        if is_reg:
            rel_sum = jnp.sum(x, axis=-1, keepdims=True) - th    # sum of cols 1..C-1
            na_margin = th - rel_sum * (1.0 / float(c - 1))      # (TN, 1)
            nll_na = nll_terms(na_margin, y0)                    # (TN, 1)
            p_na = jnp.sum(jnp.where(row_valid, nll_na, 0.0))
        else:
            p_na = jnp.float32(0.0)

        # Per-tile partial sums -> this tile's own (8,128) output block, so the
        # grid axis stays "parallel" (v7x megacore shards it across both TCs).
        sub = jax.lax.broadcasted_iota(jnp.int32, (1, 8, 128), 1)
        out_ref[...] = jnp.where(
            sub == 0, p_rel,
            jnp.where(sub == 1, p_msk, jnp.where(sub == 2, p_na, 0.0)))

    return kernel


@functools.partial(
    jax.jit,
    static_argnames=("shift", "is_reg", "eps", "reduction", "tile_rows"))
def ncr_loss(logits, labels, instance_mask, *, shift=0.0, is_reg=True,
             eps=1e-8, reduction="mean", tile_rows=None):
    """NCRLoss forward.

    logits/labels may (and, for large inputs, should) be fed as bf16 — the
    kernel streams them once (HBM-bound) and upcasts to f32 internally.
    `tile_rows` optionally overrides the auto tile size (testing only).
    """
    n, c = logits.shape
    assert labels.shape == (n, c)
    assert instance_mask.shape == (n, 1)
    mask_cols = instance_mask.shape[1]

    in_itemsize = max(logits.dtype.itemsize, labels.dtype.itemsize)
    vmem_limit = _vmem_limit_bytes()
    if tile_rows is not None:
        tn = max(1, min(int(tile_rows), n))
    else:
        tn = _choose_tile_n(n, c, in_itemsize, vmem_limit)
    grid_n = pl.cdiv(n, tn)

    kernel = _make_ncr_loss_kernel(shift, is_reg, eps, n, c, tn)

    partials = pl.pallas_call(
        kernel,
        out_shape=jax.ShapeDtypeStruct((grid_n, 8, 128), jnp.float32),
        grid=(grid_n,),
        in_specs=[
            pl.BlockSpec((tn, c), lambda i: (i, 0)),
            pl.BlockSpec((tn, c), lambda i: (i, 0)),
            pl.BlockSpec((tn, mask_cols), lambda i: (i, 0)),
        ],
        out_specs=pl.BlockSpec((1, 8, 128), lambda i: (i, 0, 0)),
        compiler_params=pltpu.CompilerParams(
            dimension_semantics=("parallel",),
            vmem_limit_bytes=vmem_limit),
    )(logits, labels, instance_mask)

    # Tiny scalar epilogue (grid_n x 3 floats) in plain JAX.
    acc = jnp.sum(partials[:, :3, 0], axis=0)   # [sum(rel*m), sum(m), sum(na)]
    loss = acc[0]
    if is_reg:
        # PyTorch broadcast (N,) * (N,1) -> (N,N).sum() == sum(mask)*sum(na).
        loss = loss + acc[1] * acc[2]
    if reduction == "mean":
        # Divides by sum(instance_mask); all-masked input -> NaN (as in torch).
        loss = loss / acc[1] * float(mask_cols)
    return loss


def ncr_loss_ref(logits, labels, instance_mask, *, shift=0.0, is_reg=True,
                 eps=1e-8, reduction="mean"):
    """Pure-JAX mirror of the PyTorch forward (for correctness checking)."""

    def compute_ce(x, y, mask):
        s = jax.nn.sigmoid(x)
        xs_pos = s
        xs_neg = 1.0 - s
        if shift is not None and shift > 0:
            xs_neg = jnp.minimum(xs_neg + shift, 1.0)
        lp = y * jnp.log(jnp.maximum(xs_pos, eps))
        ln = (1.0 - y) * jnp.log(jnp.maximum(xs_neg, eps))
        loss = (lp + ln) * mask.astype(jnp.float32)
        return -loss.sum()

    rel_margin = logits[:, 1:] - logits[:, 0][:, None]
    loss = compute_ce(rel_margin.astype(jnp.float32),
                      labels[:, 1:].astype(jnp.float32), instance_mask)
    if is_reg:
        na_margin = logits[:, 0] - logits[:, 1:].mean(-1)        # (N,)
        loss = loss + compute_ce(na_margin.astype(jnp.float32),
                                 labels[:, 0].astype(jnp.float32), instance_mask)
    if reduction == "mean":
        loss = loss / instance_mask.sum() * instance_mask.shape[1]
    return loss


if __name__ == "__main__":
    key = jax.random.PRNGKey(0)
    k1, k2, k3 = jax.random.split(key, 3)

    # --- test 1: small f32 example, default hyper-params --------------------
    N, C = 8, 16
    logits = jax.random.normal(k1, (N, C), dtype=jnp.float32) * 2.0
    rel_labels = (jax.random.uniform(k2, (N, C - 1)) < 0.2).astype(jnp.float32)
    na_label = (rel_labels.sum(axis=1, keepdims=True) == 0.0).astype(jnp.float32)
    labels = jnp.concatenate([na_label, rel_labels], axis=1)          # (N, C)
    instance_mask = jnp.ones((N, 1), jnp.float32).at[-2:, 0].set(0.0)

    out = jax.block_until_ready(ncr_loss(logits, labels, instance_mask))
    ref = ncr_loss_ref(logits, labels, instance_mask)
    np.testing.assert_allclose(np.asarray(out), np.asarray(ref),
                               rtol=1e-5, atol=5e-4)

    # --- test 2: bf16 feed (preferred HBM-bound contract) --------------------
    lb = logits.astype(jnp.bfloat16)
    yb = labels.astype(jnp.bfloat16)
    out_bf = jax.block_until_ready(ncr_loss(lb, yb, instance_mask))
    ref_bf = ncr_loss_ref(lb.astype(jnp.float32), yb.astype(jnp.float32),
                          instance_mask)
    np.testing.assert_allclose(np.asarray(out_bf), np.asarray(ref_bf),
                               rtol=1e-5, atol=5e-4)

    # --- test 3: multi-tile grid + ragged last tile + shift > 0 path --------
    N2, C2 = 20, 16
    kk = jax.random.split(k3, 3)
    logits2 = jax.random.normal(kk[0], (N2, C2), dtype=jnp.float32) * 3.0
    rel2 = (jax.random.uniform(kk[1], (N2, C2 - 1)) < 0.3).astype(jnp.float32)
    na2 = (rel2.sum(axis=1, keepdims=True) == 0.0).astype(jnp.float32)
    labels2 = jnp.concatenate([na2, rel2], axis=1)
    mask2 = (jax.random.uniform(kk[2], (N2, 1)) < 0.8).astype(jnp.float32)
    mask2 = mask2.at[0, 0].set(1.0)   # guarantee sum(mask) > 0

    out2 = jax.block_until_ready(
        ncr_loss(logits2, labels2, mask2, shift=0.1, tile_rows=8))
    ref2 = ncr_loss_ref(logits2, labels2, mask2, shift=0.1)
    np.testing.assert_allclose(np.asarray(out2), np.asarray(ref2),
                               rtol=1e-5, atol=1e-3)

    print("KERNEL_OK")
</pallas_src>

<mosaic_0001>
module attributes {stable_mosaic.version = 11 : i64} {
  func.func @kernel(%arg0: i32, %arg1: memref<8x16xf32, #tpu.memory_space<vmem>>, %arg2: memref<8x16xf32, #tpu.memory_space<vmem>>, %arg3: memref<8x1xf32, #tpu.memory_space<vmem>>, %arg4: memref<1x8x128xf32, #tpu.memory_space<vmem>>) attributes {dimension_semantics = [#tpu.dimension_semantics<parallel>], iteration_bounds = array<i64: 1>, scalar_prefetch = 0 : i64, scratch_operands = 0 : i64, tpu.core_type = #tpu.core_type<tc>, window_params = [{transform_indices = @transform_0, window_bounds = array<i64: 8, 16>}, {transform_indices = @transform_1, window_bounds = array<i64: 8, 16>}, {transform_indices = @transform_2, window_bounds = array<i64: 8, 1>}, {transform_indices = @transform_3, window_bounds = array<i64: 1, 8, 128>}]} {
    %c0 = arith.constant 0 : index
    %c0_0 = arith.constant 0 : index
    %0 = vector.load %arg1[%c0, %c0_0] : memref<8x16xf32, #tpu.memory_space<vmem>>, vector<8x16xf32>
    %c0_1 = arith.constant 0 : index
    %c0_2 = arith.constant 0 : index
    %1 = vector.load %arg2[%c0_1, %c0_2] : memref<8x16xf32, #tpu.memory_space<vmem>>, vector<8x16xf32>
    %c0_3 = arith.constant 0 : index
    %c0_4 = arith.constant 0 : index
    %2 = vector.load %arg3[%c0_3, %c0_4] : memref<8x1xf32, #tpu.memory_space<vmem>>, vector<8x1xf32>
    %c8_i32 = arith.constant 8 : i32
    %3 = arith.muli %arg0, %c8_i32 : i32
    %4 = tpu.iota {dimensions = array<i32: 0>} : vector<8x1xi32>
    %5 = vector.broadcast %3 : i32 to vector<8x1xi32>
    %6 = arith.addi %5, %4 : vector<8x1xi32>
    %c8_i32_5 = arith.constant 8 : i32
    %7 = vector.broadcast %c8_i32_5 : i32 to vector<8x1xi32>
    %8 = arith.cmpi slt, %6, %7 : vector<8x1xi32>
    %cst = arith.constant 0.000000e+00 : f32
    %9 = vector.broadcast %cst : f32 to vector<8x1xf32>
    %10 = arith.select %8, %2, %9 : vector<8x1xi1>, vector<8x1xf32>
    %11 = tpu.iota {dimensions = array<i32: 1>} : vector<1x16xi32>
    %c0_i32 = arith.constant 0 : i32
    %12 = vector.broadcast %c0_i32 : i32 to vector<1x16xi32>
    %13 = arith.cmpi eq, %11, %12 : vector<1x16xi32>
    %14 = arith.extui %13 : vector<1x16xi1> to vector<1x16xi32>
    %15 = arith.sitofp %14 : vector<1x16xi32> to vector<1x16xf32>
    %16 = vector.broadcast %15 : vector<1x16xf32> to vector<8x16xf32>
    %17 = arith.mulf %0, %16 : vector<8x16xf32>
    %cst_6 = arith.constant dense<0.000000e+00> : vector<8xf32>
    %18 = vector.multi_reduction <add>, %17, %cst_6 [1] : vector<8x16xf32> to vector<8xf32>
    %19 = vector.shape_cast %18 : vector<8xf32> to vector<8x1xf32>
    %20 = vector.broadcast %15 : vector<1x16xf32> to vector<8x16xf32>
    %21 = arith.mulf %1, %20 : vector<8x16xf32>
    %cst_7 = arith.constant dense<0.000000e+00> : vector<8xf32>
    %22 = vector.multi_reduction <add>, %21, %cst_7 [1] : vector<8x16xf32> to vector<8xf32>
    %23 = vector.shape_cast %22 : vector<8xf32> to vector<8x1xf32>
    %24 = vector.broadcast %19 : vector<8x1xf32> to vector<8x16xf32>
    %25 = arith.subf %0, %24 : vector<8x16xf32>
    %26 = math.absf %25 : vector<8x16xf32>
    %cst_8 = arith.constant 0.000000e+00 : f32
    %27 = vector.broadcast %cst_8 : f32 to vector<8x16xf32>
    %28 = arith.subf %27, %26 : vector<8x16xf32>
    %29 = math.exp %28 : vector<8x16xf32>
    %cst_9 = arith.constant 1.000000e+00 : f32
    %30 = vector.broadcast %cst_9 : f32 to vector<8x16xf32>
    %31 = arith.addf %30, %29 : vector<8x16xf32>
    %32 = math.log %31 : vector<8x16xf32>
    %cst_10 = arith.constant 0.000000e+00 : f32
    %33 = vector.broadcast %cst_10 : f32 to vector<8x16xf32>
    %34 = arith.maximumf %25, %33 : vector<8x16xf32>
    %35 = arith.addf %34, %32 : vector<8x16xf32>
    %36 = arith.subf %35, %25 : vector<8x16xf32>
    %cst_11 = arith.constant 18.420681 : f32
    %37 = vector.broadcast %cst_11 : f32 to vector<8x16xf32>
    %38 = arith.minimumf %35, %37 : vector<8x16xf32>
    %cst_12 = arith.constant 18.420681 : f32
    %39 = vector.broadcast %cst_12 : f32 to vector<8x16xf32>
    %40 = arith.minimumf %36, %39 : vector<8x16xf32>
    %41 = arith.subf %40, %38 : vector<8x16xf32>
    %42 = arith.mulf %1, %41 : vector<8x16xf32>
    %43 = arith.addf %38, %42 : vector<8x16xf32>
    %cst_13 = arith.constant dense<0.000000e+00> : vector<8xf32>
    %44 = vector.multi_reduction <add>, %43, %cst_13 [1] : vector<8x16xf32> to vector<8xf32>
    %45 = vector.shape_cast %44 : vector<8xf32> to vector<8x1xf32>
    %cst_14 = arith.constant 0.693147182 : f32
    %46 = vector.broadcast %cst_14 : f32 to vector<8x1xf32>
    %47 = arith.subf %45, %46 : vector<8x1xf32>
    %cst_15 = arith.constant 0.000000e+00 : f32
    %48 = vector.broadcast %cst_15 : f32 to vector<8x1xf32>
    %49 = arith.select %8, %47, %48 : vector<8x1xi1>, vector<8x1xf32>
    %50 = arith.mulf %49, %10 : vector<8x1xf32>
    %51 = vector.shape_cast %50 : vector<8x1xf32> to vector<1x8x1xf32>
    %cst_16 = arith.constant dense<0.000000e+00> : vector<1xf32>
    %52 = vector.multi_reduction <add>, %51, %cst_16 [1, 2] : vector<1x8x1xf32> to vector<1xf32>
    %53 = vector.shape_cast %52 : vector<1xf32> to vector<1x1x1xf32>
    %54 = vector.extract %53[0, 0, 0] : f32 from vector<1x1x1xf32>
    %55 = vector.shape_cast %10 : vector<8x1xf32> to vector<1x8x1xf32>
    %cst_17 = arith.constant dense<0.000000e+00> : vector<1xf32>
    %56 = vector.multi_reduction <add>, %55, %cst_17 [1, 2] : vector<1x8x1xf32> to vector<1xf32>
    %57 = vector.shape_cast %56 : vector<1xf32> to vector<1x1x1xf32>
    %58 = vector.extract %57[0, 0, 0] : f32 from vector<1x1x1xf32>
    %cst_18 = arith.constant dense<0.000000e+00> : vector<8xf32>
    %59 = vector.multi_reduction <add>, %0, %cst_18 [1] : vector<8x16xf32> to vector<8xf32>
    %60 = vector.shape_cast %59 : vector<8xf32> to vector<8x1xf32>
    %61 = arith.subf %60, %19 : vector<8x1xf32>
    %cst_19 = arith.constant 0.0666666701 : f32
    %62 = vector.broadcast %cst_19 : f32 to vector<8x1xf32>
    %63 = arith.mulf %61, %62 : vector<8x1xf32>
    %64 = arith.subf %19, %63 : vector<8x1xf32>
    %65 = math.absf %64 : vector<8x1xf32>
    %cst_20 = arith.constant 0.000000e+00 : f32
    %66 = vector.broadcast %cst_20 : f32 to vector<8x1xf32>
    %67 = arith.subf %66, %65 : vector<8x1xf32>
    %68 = math.exp %67 : vector<8x1xf32>
    %cst_21 = arith.constant 1.000000e+00 : f32
    %69 = vector.broadcast %cst_21 : f32 to vector<8x1xf32>
    %70 = arith.addf %69, %68 : vector<8x1xf32>
    %71 = math.log %70 : vector<8x1xf32>
    %cst_22 = arith.constant 0.000000e+00 : f32
    %72 = vector.broadcast %cst_22 : f32 to vector<8x1xf32>
    %73 = arith.maximumf %64, %72 : vector<8x1xf32>
    %74 = arith.addf %73, %71 : vector<8x1xf32>
    %75 = arith.subf %74, %64 : vector<8x1xf32>
    %cst_23 = arith.constant 18.420681 : f32
    %76 = vector.broadcast %cst_23 : f32 to vector<8x1xf32>
    %77 = arith.minimumf %74, %76 : vector<8x1xf32>
    %cst_24 = arith.constant 18.420681 : f32
    %78 = vector.broadcast %cst_24 : f32 to vector<8x1xf32>
    %79 = arith.minimumf %75, %78 : vector<8x1xf32>
    %80 = arith.subf %79, %77 : vector<8x1xf32>
    %81 = arith.mulf %23, %80 : vector<8x1xf32>
    %82 = arith.addf %77, %81 : vector<8x1xf32>
    %cst_25 = arith.constant 0.000000e+00 : f32
    %83 = vector.broadcast %cst_25 : f32 to vector<8x1xf32>
    %84 = arith.select %8, %82, %83 : vector<8x1xi1>, vector<8x1xf32>
    %85 = vector.shape_cast %84 : vector<8x1xf32> to vector<1x8x1xf32>
    %cst_26 = arith.constant dense<0.000000e+00> : vector<1xf32>
    %86 = vector.multi_reduction <add>, %85, %cst_26 [1, 2] : vector<1x8x1xf32> to vector<1xf32>
    %87 = vector.shape_cast %86 : vector<1xf32> to vector<1x1x1xf32>
    %88 = vector.extract %87[0, 0, 0] : f32 from vector<1x1x1xf32>
    %89 = tpu.iota {dimensions = array<i32: 1>} : vector<1x8x128xi32>
    %c0_i32_27 = arith.constant 0 : i32
    %90 = vector.broadcast %c0_i32_27 : i32 to vector<1x8x128xi32>
    %91 = arith.cmpi eq, %89, %90 : vector<1x8x128xi32>
    %c1_i32 = arith.constant 1 : i32
    %92 = vector.broadcast %c1_i32 : i32 to vector<1x8x128xi32>
    %93 = arith.cmpi eq, %89, %92 : vector<1x8x128xi32>
    %c2_i32 = arith.constant 2 : i32
    %94 = vector.broadcast %c2_i32 : i32 to vector<1x8x128xi32>
    %95 = arith.cmpi eq, %89, %94 : vector<1x8x128xi32>
    %cst_28 = arith.constant 0.000000e+00 : f32
    %96 = vector.broadcast %88 : f32 to vector<1x8x128xf32>
    %97 = vector.broadcast %cst_28 : f32 to vector<1x8x128xf32>
    %98 = arith.select %95, %96, %97 : vector<1x8x128xi1>, vector<1x8x128xf32>
    %99 = vector.broadcast %58 : f32 to vector<1x8x128xf32>
    %100 = arith.select %93, %99, %98 : vector<1x8x128xi1>, vector<1x8x128xf32>
    %101 = vector.broadcast %54 : f32 to vector<1x8x128xf32>
    %102 = arith.select %91, %101, %100 : vector<1x8x128xi1>, vector<1x8x128xf32>
    %c0_29 = arith.constant 0 : index
    %c0_30 = arith.constant 0 : index
    %c0_31 = arith.constant 0 : index
    %103 = vector.load %arg4[%c0_29, %c0_30, %c0_31] : memref<1x8x128xf32, #tpu.memory_space<vmem>>, vector<1x8x128xf32>
    tpu.vector_store %arg4[%c0_29, %c0_30, %c0_31], %102 {strides = array<i32>} : memref<1x8x128xf32, #tpu.memory_space<vmem>>, vector<1x8x128xf32>,
    return
  }
  func.func @transform_0(%arg0: i32) -> (i32, i32) {
    %c0_i32 = arith.constant 0 : i32
    %c0_i32_0 = arith.constant 0 : i32
    return %arg0, %c0_i32 : i32, i32
  }
  func.func @transform_1(%arg0: i32) -> (i32, i32) {
    %c0_i32 = arith.constant 0 : i32
    %c0_i32_0 = arith.constant 0 : i32
    return %arg0, %c0_i32 : i32, i32
  }
  func.func @transform_2(%arg0: i32) -> (i32, i32) {
    %c0_i32 = arith.constant 0 : i32
    %c0_i32_0 = arith.constant 0 : i32
    return %arg0, %c0_i32 : i32, i32
  }
  func.func @transform_3(%arg0: i32) -> (i32, i32, i32) {
    %c0_i32 = arith.constant 0 : i32
    %c0_i32_0 = arith.constant 0 : i32
    %c0_i32_1 = arith.constant 0 : i32
    return %arg0, %c0_i32, %c0_i32_0 : i32, i32, i32
  }
}

</mosaic_0001>

<bundles_post_ra>
// kernel: ncr_loss.1
= control target key start
LH: loop header
LB: loop body
LE: loop exit
PB: predicated region body
PF: predicated region fallthrough
CT: control target
= control target key end

     0   :  { %8 = vsyncpa [#allocation3], 0  ;;  %s182_s12 = smov [#allocation2]   ;;  %s234_s0 = inlined_call_operand.vmem [shape: f32[8,16], index: 0, kind: input, shape index: {}]   ;;  %s235_s1 = inlined_call_operand.hbm [shape: f32[8,16], index: 1, kind: input, shape index: {}]   ;;  %s236_s2 = inlined_call_operand.vmem [shape: f32[8,1], index: 2, kind: input, shape index: {}]   ;;  %s237_s3 = inlined_call_operand.vmem [shape: f32[1,8,128], index: 3, kind: output, shape index: {}]  }
   0x1   :  { %s17_s13 = sshll.u32 %s182_s12, 4  ;;  %s158_s16 = scalar_lea.hbm %s235_s1, 128  ;;  %s18_s13 = int_to_ptr.vmem [resolvable:$true] %s17_s13 }
   0x2   :  { %p159_p0 = scmp.ne.s32.totalorder %s235_s1, %s158_s16  ;;  %p162_p1 = scmp.lt.u32.totalorder %s158_s16, %s235_s1 }
   0x4   :  { %p164_p2 = pnand %p162_p1, %p159_p0 }
   0x6   :  { %167 = shalt.err (!%p164_p2)
}
   0x7   :  { %s168_s21 = scalar_lea.vmem %s18_s13, 128  ;;  %p173_p4 = scmp.lt.s32.totalorder %s18_s13, %s18_s13 }
   0x8   :  { %p169_p3 = scmp.ne.s32.totalorder %s18_s13, %s168_s21  ;;  %p174_p5 = scmp.lt.s32.totalorder %s168_s21, %s168_s21 }
   0xa   :  { %p175_p6 = por %p174_p5, %p173_p4 }
   0xc   :  { %p176_p7 = pnand %p175_p6, %p169_p3 }
   0xe   :  { %179 = shalt.err (!%p176_p7)
}
   0xf   :  { %20 = dma.hbm_to_vmem [thread:$0]  %s235_s1, 128, %s18_s13, [#allocation3]  }
  0x10   :  { %180 = dma.done.wait [#allocation3], 128  }
  0x11   :  { %181 = vsyncadd [#allocation3], 4294967168  ;;  %v30_v0 = vlaneseq  ;;  %v183_v2 = vmov 0.0   ;;  %v26_v4 = vld [vmem:[%s234_s0] sm:$0xff]  ;;  %vm42_vm1 = vcmask 130048   ;;  %vm72_vm2 = vcmask 7168  }
  0x12   :  { %v27_v5 = vld [vmem:[#allocation2] sm:$0xff]  ;;  %v93_v10 = vsel %vm42_vm1, %v26_v4, 0.0 }
  0x13   :  { %v37_v1 = vand.u32 127, %v30_v0  ;;  %v28_v29 = vld [vmem:[%s236_s2] sm:$0xff] }
  0x14   :  { %v83_v30 = vsel %vm72_vm2, %v28_v29, 0.0 }
  0x15   :  { %vm38_vm0 = vcmp.eq.s32.totalorder %v37_v1, 0 }
  0x16   :  { %v140_v3 = vsel %vm38_vm0, 1.0, %v183_v2 }
  0x17   :  { %v41_v6 = vmul.f32 %v140_v3, %v26_v4  ;;  %v46_v7 = vmul.f32 %v140_v3, %v27_v5 }
  0x19   :  { %v43_v8 = vsel %vm42_vm1, %v41_v6, 0.0  ;;  %v47_v9 = vsel %vm42_vm1, %v46_v7, 0.0 }
  0x1a   :  { %44 = vadd.xlane.f32.xlu0 %v43_v8  ;;  %48 = vadd.xlane.f32.xlu1 %v47_v9 }
  0x1e   :  { %94 = vadd.xlane.f32.xlu0 %v93_v10 }
  0xa7   :  { %v45_v11 = vpop.xlane.xlu0 %44  ;;  %v49_v47 = vpop.xlane.xlu1 %48 }
  0xa8   :  { %v50_v12 = vsub.f32 %v26_v4, %v45_v11 }
  0xaa   :  { %v51_v13 = vand.u32 2147483647, %v50_v12  ;;  %v58_v19 = vmax.f32 %v50_v12, 0.0 }
  0xab   :  { %v95_v31 = vpop.xlane.xlu0 %94 }
  0xac   :  { %v52_v14 = vsub.f32 0.0, %v51_v13  ;;  %v96_v32 = vsub.f32 %v95_v31, %v45_v11 }
  0xae   :  { %v53_v15 = vmul.f32 1.442695, %v52_v14  ;;  %v97_v33 = vmul.f32 0.06666667, %v96_v32  ;;  %v31_v14 = vshrl.u32 %v30_v0, 7 }
  0xb0   :  { %150 = vpow2.f32 %v53_v15  ;;  %v98_v34 = vsub.f32 %v45_v11, %v97_v33  ;;  %vm127_vm3 = vcmp.eq.s32.totalorder %v31_v14, 2  ;;  %vm126_vm4 = vcmp.eq.s32.totalorder %v31_v14, 1 }
  0xb1   :  { %vm125_vm5 = vcmp.eq.s32.totalorder %v31_v14, 0 }
  0xb2   :  { %v99_v35 = vand.u32 2147483647, %v98_v34  ;;  %v106_v42 = vmax.f32 %v98_v34, 0.0 }
  0xb4   :  { %v100_v36 = vsub.f32 0.0, %v99_v35 }
  0xb6   :  { %v101_v37 = vmul.f32 1.442695, %v100_v36 }
  0xba   :  { %v151_v16 = vpop.eup %150 }
  0xbb   :  { %v55_v17 = vadd.f32 1.0, %v151_v16 }
  0xbd   :  { %152 = vlog2.f32 %v55_v17 }
  0xbe   :  { %154 = vpow2.f32 %v101_v37 }
  0xc7   :  { %v153_v18 = vpop.eup %152 }
  0xc8   :  { %v57_v20 = vmul.f32 0.6931472, %v153_v18  ;;  %v155_v38 = vpop.eup %154 }
  0xc9   :  { %v103_v39 = vadd.f32 1.0, %v155_v38 }
  0xca   :  { %v59_v21 = vadd.f32 %v58_v19, %v57_v20 }
  0xcb   :  { %156 = vlog2.f32 %v103_v39 }
  0xcc   :  { %v60_v22 = vsub.f32 %v59_v21, %v50_v12  ;;  %v61_v23 = vmin.f32 %v59_v21, 18.420681 }
  0xce   :  { %v62_v24 = vmin.f32 %v60_v22, 18.420681 }
  0xd0   :  { %v63_v25 = vsub.f32 %v62_v24, %v61_v23 }
  0xd2   :  { %v64_v26 = vmul.f32 %v63_v25, %v27_v5 }
  0xd4   :  { %v65_v27 = vadd.f32 %v64_v26, %v61_v23 }
  0xd5   :  { %v157_v40 = vpop.eup %156 }
  0xd6   :  { %v66_v28 = vsel %vm42_vm1, %v65_v27, 0.0  ;;  %v105_v41 = vmul.f32 0.6931472, %v157_v40 }
  0xd7   :  { %67 = vadd.xlane.f32.xlu1 %v66_v28 }
  0xd8   :  { %v107_v43 = vadd.f32 %v106_v42, %v105_v41 }
  0xda   :  { %v108_v44 = vsub.f32 %v107_v43, %v98_v34  ;;  %v109_v46 = vmin.f32 %v107_v43, 18.420681 }
  0xdb   :  { %84 = vadd.xlane.f32.xlu1 %v83_v30 }
  0xdc   :  { %v110_v45 = vmin.f32 %v108_v44, 18.420681 }
  0xde   :  { %v111_v48 = vsub.f32 %v110_v45, %v109_v46 }
  0xe0   :  { %v112_v50 = vmul.f32 %v111_v48, %v49_v47 }
  0xe2   :  { %v113_v54 = vadd.f32 %v112_v50, %v109_v46 }
  0xe4   :  { %v115_v55 = vsel %vm72_vm2, %v113_v54, 0.0 }
 0x164   :  { %v68_v49 = vpop.xlane.xlu1 %67 }
 0x165   :  { %v141_v51 = vadd.f32 -0.6931472, %v68_v49 }
 0x167   :  { %v71_v52 = vmul.f32 %v141_v51, %v28_v29 }
 0x168   :  { %v85_v56 = vpop.xlane.xlu1 %84 }
 0x169   :  { %v73_v53 = vsel %vm72_vm2, %v71_v52, 0.0  ;;  %v86_v57 = vrot.slane %v85_v56, 4 }
 0x16a   :  { %74 = vadd.xlane.f32.xlu0 %v73_v53 }
 0x16b   :  { %v87_v58 = vadd.f32 %v86_v57, %v85_v56 }
 0x16d   :  { %v88_v59 = vrot.slane %v87_v58, 2 }
 0x16e   :  { %116 = vadd.xlane.f32.xlu0 %v115_v55 }
 0x16f   :  { %v89_v63 = vadd.f32 %v88_v59, %v87_v58 }
 0x171   :  { %v90_v6 = vrot.slane %v89_v63, 1 }
 0x173   :  { %v91_v11 = vadd.f32 %v90_v6, %v89_v63 }
 0x1f7   :  { %v75_v60 = vpop.xlane.xlu0 %74 }
 0x1f8   :  { %v76_v61 = vrot.slane %v75_v60, 4 }
 0x1fa   :  { %v77_v62 = vadd.f32 %v76_v61, %v75_v60 }
 0x1fb   :  { %v117_v1 = vpop.xlane.xlu0 %116 }
 0x1fc   :  { %v78_v2 = vrot.slane %v77_v62, 2  ;;  %v118_v3 = vrot.slane %v117_v1, 4 }
 0x1fe   :  { %v119_v4 = vadd.f32 %v118_v3, %v117_v1  ;;  %v79_v5 = vadd.f32 %v78_v2, %v77_v62 }
 0x200   :  { %v120_v7 = vrot.slane %v119_v4, 2  ;;  %v80_v8 = vrot.slane %v79_v5, 1 }
 0x202   :  { %v121_v9 = vadd.f32 %v120_v7, %v119_v4  ;;  %v81_v10 = vadd.f32 %v80_v8, %v79_v5 }
 0x204   :  { %142 = vpush %v81_v10  ;;  %v122_v12 = vrot.slane %v121_v9, 1 }
 0x205   :  { %144 = vpush %v91_v11 }
 0x206   :  { %v123_v13 = vadd.f32 %v122_v12, %v121_v9 }
 0x208   :  { %146 = vpush %v123_v13 }
 0x235   :  { %s143_s2 = spop %142 }
 0x236   :  { %s145_s26 = spop %144  ;;  %v132_v18 = vstv %s143_s2 }
 0x237   :  { %v130_v16 = vstv %s145_s26 }
 0x239   :  { %s147_s27 = spop %146 }
 0x23a   :  { %v128_v15 = vstv %s147_s27 }
 0x23b   :  { %v129_v17 = vsel %vm127_vm3, %v128_v15, 0.0 }
 0x23c   :  { %v131_v19 = vsel %vm126_vm4, %v130_v16, %v129_v17 }
 0x23d   :  { %v133_v20 = vsel %vm125_vm5, %v132_v18, %v131_v19 }
 0x23e   :  { %134 = vst [vmem:[%s237_s3] sm:$0xff] %v133_v20 }
 0x23f   :  { %139 = vsyncpa [#allocation3], 1 }

</bundles_post_ra>
